<compile_context>
chip_gen: v5e
topology: v5e:2x2
jax: 0.10.0
libtpu: 0.0.40
codegen_flags: <defaults>
</compile_context>

<pallas_src>
import functools
import math

import jax
import jax.numpy as jnp
from jax.experimental import pallas as pl
from jax.experimental.pallas import tpu as pltpu


_TM_MAX, _TN_MAX, _TK_MAX = 512, 512, 1024


def _round_up(n, m):
    return ((n + m - 1) // m) * m


def _cdiv(a, b):
    return (a + b - 1) // b


def _pick_tiles(M, K, N):
    tm = min(_TM_MAX, _round_up(M, 8))
    tn = min(_TN_MAX, _round_up(N, 128))
    tk = min(_TK_MAX, _round_up(K, 128))
    # v7x megacore: keep >= 2 blocks along a parallel axis when the problem
    # has room (avoid collapsing both i and j to a single block).
    if _cdiv(M, tm) == 1 and _cdiv(N, tn) == 1 and M >= 16:
        tm = _round_up(_cdiv(M, 2), 8)
    return tm, tn, tk


def _y_update_kernel(A_ref, x_ref, mu_ref, o_ref, *, k_total):
    """o = ELU(mu * (1 - A @ x)) + 1, accumulated directly into o_ref (f32)."""
    k = pl.program_id(2)
    nk = pl.num_programs(2)
    is_last = k == nk - 1

    @pl.when(k == 0)
    def _init():
        o_ref[...] = jnp.zeros_like(o_ref)

    tk = A_ref.shape[-1]
    rem = k_total % tk                    # static Python int
    if rem == 0:
        # K divides evenly into tk blocks: clean MXU accumulate every step.
        o_ref[...] += jnp.dot(A_ref[...], x_ref[...],
                              preferred_element_type=jnp.float32)
    else:
        # Unpadded A/x: the last k block is partial.  Zero-mask the K-tail of
        # both operands (guards against stale/NaN VMEM in the padded region).
        @pl.when(jnp.logical_not(is_last))
        def _full_step():
            o_ref[...] += jnp.dot(A_ref[...], x_ref[...],
                                  preferred_element_type=jnp.float32)

        @pl.when(is_last)
        def _tail_step():
            col = jax.lax.broadcasted_iota(jnp.int32, A_ref.shape, 1)
            a = jnp.where(col < rem, A_ref[...], 0.0)
            row = jax.lax.broadcasted_iota(jnp.int32, x_ref.shape, 0)
            b = jnp.where(row < rem, x_ref[...], 0.0)
            o_ref[...] += jnp.dot(a, b, preferred_element_type=jnp.float32)

    @pl.when(is_last)
    def _epilogue():
        mu = mu_ref[0]                    # scalar from SMEM
        z = mu * (1.0 - o_ref[...])
        # ELU(z) + 1  ==  z + 1 (z > 0)  else exp(z); clamp exp arg so the
        # unselected branch never overflows.
        o_ref[...] = jnp.where(z > 0, z + 1.0, jnp.exp(jnp.minimum(z, 0.0)))


def y_update_forward(A, x, mu, *, tm=None, tn=None, tk=None):
    """Computes ELU(mu * (1 - A @ x)) + 1 for A:(M,K), x:(K,N), scalar mu."""
    M, K = A.shape
    Kx, N = x.shape
    assert K == Kx, "inner dimensions of A and x must match"

    A = A.astype(jnp.float32)
    x = x.astype(jnp.float32)
    mu_arr = jnp.asarray(mu, jnp.float32).reshape(1)

    dtm, dtn, dtk = _pick_tiles(M, K, N)
    tm = dtm if tm is None else tm
    tn = dtn if tn is None else tn
    tk = dtk if tk is None else tk
    assert tm % 8 == 0 and tn % 128 == 0 and tk % 128 == 0, (tm, tn, tk)

    grid = (_cdiv(M, tm), _cdiv(N, tn), _cdiv(K, tk))
    kernel = functools.partial(_y_update_kernel, k_total=K)

    return pl.pallas_call(
        kernel,
        out_shape=jax.ShapeDtypeStruct((M, N), jnp.float32),
        grid_spec=pltpu.PrefetchScalarGridSpec(
            num_scalar_prefetch=0,
            grid=grid,
            in_specs=[
                pl.BlockSpec((tm, tk), lambda i, j, k: (i, k)),      # A tile
                pl.BlockSpec((tk, tn), lambda i, j, k: (k, j)),      # x tile
                pl.BlockSpec(memory_space=pltpu.MemorySpace.SMEM),   # mu
            ],
            out_specs=pl.BlockSpec((tm, tn), lambda i, j, k: (i, j)),
        ),
        compiler_params=pltpu.CompilerParams(
            dimension_semantics=("parallel", "parallel", "arbitrary"),
            vmem_limit_bytes=48 * 1024 * 1024),
        cost_estimate=pl.CostEstimate(
            flops=2 * M * K * N,
            transcendentals=M * N,
            bytes_accessed=4 * (M * K + K * N + M * N)),
    )(A, x, mu_arr)


def _reference(A, x, mu):
    """Plain-JAX mirror of the PyTorch forward."""
    z = mu * (1.0 - A @ x)
    return jnp.where(z > 0, z, jnp.expm1(z)) + 1.0


if __name__ == "__main__":
    key = jax.random.PRNGKey(0)
    kA, kx, kA2, kx2 = jax.random.split(key, 4)

    # Case 1: auto-picked tiles; K and N deliberately not 128-aligned
    # (exercises the in-kernel K-tail masking and partial output columns).
    M, K, N = 96, 200, 160
    mu = 0.75
    A = jax.random.normal(kA, (M, K), jnp.float32) / math.sqrt(K)
    x = jax.random.uniform(kx, (K, N), jnp.float32)
    out = y_update_forward(A, x, mu)
    jax.block_until_ready(out)
    ref = _reference(A, x, mu)
    assert out.shape == (M, N)
    assert jnp.allclose(out, ref, atol=1e-4, rtol=1e-4), float(
        jnp.max(jnp.abs(out - ref)))

    # Case 2: small explicit tiles -> multi-step k reduction with a masked
    # K-tail plus a partial output block along N.
    M2, K2, N2 = 64, 300, 144
    mu2 = 1.25
    A2 = jax.random.normal(kA2, (M2, K2), jnp.float32) / math.sqrt(K2)
    x2 = jax.random.uniform(kx2, (K2, N2), jnp.float32)
    out2 = y_update_forward(A2, x2, mu2, tm=32, tn=128, tk=128)
    jax.block_until_ready(out2)
    ref2 = _reference(A2, x2, mu2)
    assert out2.shape == (M2, N2)
    assert jnp.allclose(out2, ref2, atol=1e-4, rtol=1e-4), float(
        jnp.max(jnp.abs(out2 - ref2)))

    print("KERNEL_OK")
</pallas_src>

<mosaic_0001>
module attributes {stable_mosaic.version = 11 : i64} {
  func.func @_y_update_kernel(%arg0: i32, %arg1: i32, %arg2: i32, %arg3: memref<48x256xf32, #tpu.memory_space<vmem>>, %arg4: memref<256x256xf32, #tpu.memory_space<vmem>>, %arg5: memref<1xf32, #tpu.memory_space<smem>>, %arg6: memref<48x256xf32, #tpu.memory_space<vmem>>) attributes {dimension_semantics = [#tpu.dimension_semantics<parallel>, #tpu.dimension_semantics<parallel>, #tpu.dimension_semantics<arbitrary>], iteration_bounds = array<i64: 2, 1, 1>, scalar_prefetch = 0 : i64, scratch_operands = 0 : i64, tpu.core_type = #tpu.core_type<tc>, window_params = [{transform_indices = @transform_0, window_bounds = array<i64: 48, 256>}, {transform_indices = @transform_1, window_bounds = array<i64: 256, 256>}, {transform_indices = @transform_2, window_bounds = array<i64: 1>}, {transform_indices = @transform_3, window_bounds = array<i64: 48, 256>}]} {
    %c0_i32 = arith.constant 0 : i32
    %0 = arith.cmpi eq, %arg2, %c0_i32 : i32
    %c0_i32_0 = arith.constant 0 : i32
    %1 = arith.cmpi eq, %arg2, %c0_i32_0 : i32
    %2 = arith.extui %1 : i1 to i32
    %c0_i32_1 = arith.constant 0 : i32
    %3 = arith.cmpi ne, %2, %c0_i32_1 : i32
    scf.if %3 {
      %cst = arith.constant 0.000000e+00 : f32
      %11 = vector.broadcast %cst : f32 to vector<48x256xf32>
      %c0 = arith.constant 0 : index
      %c0_5 = arith.constant 0 : index
      %12 = vector.load %arg6[%c0, %c0_5] : memref<48x256xf32, #tpu.memory_space<vmem>>, vector<48x256xf32>
      tpu.vector_store %arg6[%c0, %c0_5], %11 {strides = array<i32>} : memref<48x256xf32, #tpu.memory_space<vmem>>, vector<48x256xf32>,
    } else {
    }
    %true = arith.constant true
    %4 = arith.xori %0, %true : i1
    %5 = arith.extui %4 : i1 to i32
    %c0_i32_2 = arith.constant 0 : i32
    %6 = arith.cmpi ne, %5, %c0_i32_2 : i32
    scf.if %6 {
      %c0 = arith.constant 0 : index
      %c0_5 = arith.constant 0 : index
      %11 = vector.load %arg6[%c0, %c0_5] : memref<48x256xf32, #tpu.memory_space<vmem>>, vector<48x256xf32>
      %c0_6 = arith.constant 0 : index
      %c0_7 = arith.constant 0 : index
      %12 = vector.load %arg3[%c0_6, %c0_7] : memref<48x256xf32, #tpu.memory_space<vmem>>, vector<48x256xf32>
      %c0_8 = arith.constant 0 : index
      %c0_9 = arith.constant 0 : index
      %13 = vector.load %arg4[%c0_8, %c0_9] : memref<256x256xf32, #tpu.memory_space<vmem>>, vector<256x256xf32>
      %cst = arith.constant dense<0.000000e+00> : vector<48x256xf32>
      %14 = tpu.matmul %12, %13, %cst {dimension_numbers = #tpu.dot_dimension_numbers<[1], [0], [0], [1], [0, 0, 1, 1], [], []>} : vector<48x256xf32>, vector<256x256xf32>, vector<48x256xf32> -> vector<48x256xf32>
      %15 = arith.addf %11, %14 : vector<48x256xf32>
      %c0_10 = arith.constant 0 : index
      %c0_11 = arith.constant 0 : index
      %16 = vector.load %arg6[%c0_10, %c0_11] : memref<48x256xf32, #tpu.memory_space<vmem>>, vector<48x256xf32>
      tpu.vector_store %arg6[%c0_10, %c0_11], %15 {strides = array<i32>} : memref<48x256xf32, #tpu.memory_space<vmem>>, vector<48x256xf32>,
    } else {
    }
    %7 = arith.extui %0 : i1 to i32
    %c0_i32_3 = arith.constant 0 : i32
    %8 = arith.cmpi ne, %7, %c0_i32_3 : i32
    scf.if %8 {
      %11 = tpu.iota {dimensions = array<i32: 1>} : vector<48x256xi32>
      %c200_i32 = arith.constant 200 : i32
      %12 = vector.broadcast %c200_i32 : i32 to vector<48x256xi32>
      %13 = arith.cmpi slt, %11, %12 : vector<48x256xi32>
      %c0 = arith.constant 0 : index
      %c0_5 = arith.constant 0 : index
      %14 = vector.load %arg3[%c0, %c0_5] : memref<48x256xf32, #tpu.memory_space<vmem>>, vector<48x256xf32>
      %cst = arith.constant 0.000000e+00 : f32
      %15 = vector.broadcast %cst : f32 to vector<48x256xf32>
      %16 = arith.select %13, %14, %15 : vector<48x256xi1>, vector<48x256xf32>
      %17 = tpu.iota {dimensions = array<i32: 0>} : vector<256x256xi32>
      %c200_i32_6 = arith.constant 200 : i32
      %18 = vector.broadcast %c200_i32_6 : i32 to vector<256x256xi32>
      %19 = arith.cmpi slt, %17, %18 : vector<256x256xi32>
      %c0_7 = arith.constant 0 : index
      %c0_8 = arith.constant 0 : index
      %20 = vector.load %arg4[%c0_7, %c0_8] : memref<256x256xf32, #tpu.memory_space<vmem>>, vector<256x256xf32>
      %cst_9 = arith.constant 0.000000e+00 : f32
      %21 = vector.broadcast %cst_9 : f32 to vector<256x256xf32>
      %22 = arith.select %19, %20, %21 : vector<256x256xi1>, vector<256x256xf32>
      %c0_10 = arith.constant 0 : index
      %c0_11 = arith.constant 0 : index
      %23 = vector.load %arg6[%c0_10, %c0_11] : memref<48x256xf32, #tpu.memory_space<vmem>>, vector<48x256xf32>
      %cst_12 = arith.constant dense<0.000000e+00> : vector<48x256xf32>
      %24 = tpu.matmul %16, %22, %cst_12 {dimension_numbers = #tpu.dot_dimension_numbers<[1], [0], [0], [1], [0, 0, 1, 1], [], []>} : vector<48x256xf32>, vector<256x256xf32>, vector<48x256xf32> -> vector<48x256xf32>
      %25 = arith.addf %23, %24 : vector<48x256xf32>
      %c0_13 = arith.constant 0 : index
      %c0_14 = arith.constant 0 : index
      %26 = vector.load %arg6[%c0_13, %c0_14] : memref<48x256xf32, #tpu.memory_space<vmem>>, vector<48x256xf32>
      tpu.vector_store %arg6[%c0_13, %c0_14], %25 {strides = array<i32>} : memref<48x256xf32, #tpu.memory_space<vmem>>, vector<48x256xf32>,
    } else {
    }
    %9 = arith.extui %0 : i1 to i32
    %c0_i32_4 = arith.constant 0 : i32
    %10 = arith.cmpi ne, %9, %c0_i32_4 : i32
    scf.if %10 {
      %c0 = arith.constant 0 : index
      %11 = memref.load %arg5[%c0] : memref<1xf32, #tpu.memory_space<smem>>
      %c0_5 = arith.constant 0 : index
      %c0_6 = arith.constant 0 : index
      %12 = vector.load %arg6[%c0_5, %c0_6] : memref<48x256xf32, #tpu.memory_space<vmem>>, vector<48x256xf32>
      %cst = arith.constant 1.000000e+00 : f32
      %13 = vector.broadcast %cst : f32 to vector<48x256xf32>
      %14 = arith.subf %13, %12 : vector<48x256xf32>
      %15 = vector.broadcast %11 : f32 to vector<48x256xf32>
      %16 = arith.mulf %15, %14 : vector<48x256xf32>
      %cst_7 = arith.constant 0.000000e+00 : f32
      %17 = vector.broadcast %cst_7 : f32 to vector<48x256xf32>
      %18 = arith.cmpf ogt, %16, %17 : vector<48x256xf32>
      %cst_8 = arith.constant 1.000000e+00 : f32
      %19 = vector.broadcast %cst_8 : f32 to vector<48x256xf32>
      %20 = arith.addf %16, %19 : vector<48x256xf32>
      %cst_9 = arith.constant 0.000000e+00 : f32
      %21 = vector.broadcast %cst_9 : f32 to vector<48x256xf32>
      %22 = arith.minimumf %16, %21 : vector<48x256xf32>
      %23 = math.exp %22 : vector<48x256xf32>
      %24 = arith.select %18, %20, %23 : vector<48x256xi1>, vector<48x256xf32>
      %c0_10 = arith.constant 0 : index
      %c0_11 = arith.constant 0 : index
      %25 = vector.load %arg6[%c0_10, %c0_11] : memref<48x256xf32, #tpu.memory_space<vmem>>, vector<48x256xf32>
      tpu.vector_store %arg6[%c0_10, %c0_11], %24 {strides = array<i32>} : memref<48x256xf32, #tpu.memory_space<vmem>>, vector<48x256xf32>,
    } else {
    }
    return
  }
  func.func @transform_0(%arg0: i32, %arg1: i32, %arg2: i32) -> (i32, i32) {
    %c0_i32 = arith.constant 0 : i32
    return %arg0, %arg2 : i32, i32
  }
  func.func @transform_1(%arg0: i32, %arg1: i32, %arg2: i32) -> (i32, i32) {
    %c0_i32 = arith.constant 0 : i32
    return %arg2, %arg1 : i32, i32
  }
  func.func @transform_2(%arg0: i32, %arg1: i32, %arg2: i32) -> i32 {
    %c0_i32 = arith.constant 0 : i32
    %c0_i32_0 = arith.constant 0 : i32
    return %c0_i32 : i32
  }
  func.func @transform_3(%arg0: i32, %arg1: i32, %arg2: i32) -> (i32, i32) {
    %c0_i32 = arith.constant 0 : i32
    return %arg0, %arg1 : i32, i32
  }
}

</mosaic_0001>

<bundles_post_ra>
// kernel: tpu_custom_call.1
= control target key start
LH: loop header
LB: loop body
LE: loop exit
PB: predicated region body
PF: predicated region fallthrough
CT: control target
= control target key end

     0   :  { %s1313_s14 = smov 0   ;;  %s1315_s15 = smov 0   ;;  %s1585_s0 = inlined_call_operand.vmem [shape: f32[96,200], index: 0, kind: input, shape index: {}]   ;;  %s1586_s1 = inlined_call_operand.vmem [shape: f32[200,160], index: 1, kind: input, shape index: {}]   ;;  %s1587_s2 = inlined_call_operand.<no memory space> [shape: f32[1], index: 2, kind: input, shape index: {}]   ;;  %s1588_s3 = inlined_call_operand.vmem [shape: f32[96,160], index: 3, kind: output, shape index: {}]  }
   0x1   :  { %8 = sst [smem:[#allocation2]] %s1587_s2  ;;  %s1317_s16 = smov 0  }
   0x2 LB: > { %s33_s2 = sadd.s32 1, %s1284_s15  ;;  %p1196_p0 = scmp.ge.s32.totalorder %s1288_s16, 1  ;;  %s1288_s16 = sphi %s1317_s16, %s14_s16   ;;  %s1284_s15 = sphi %s1315_s15, %s1591_s15   ;;  %s1280_s14 = sphi %s1313_s14, %s1590_s14  }
   0x3   : > { %p35_p1 = scmp.ge.s32.totalorder %s33_s2, 2  ;;  %p193_p2 = scmp.lt.s32.totalorder %s1288_s16, 3 }
   0x5   : > { %s1593_s2 = smov (%p35_p1, %s33_s2), 0  ;;  %p194_p3 = pnand %p1196_p0, %p193_p2 }
   0x6   : > { %s240_s29 = smul.u32 (!%p194_p3), 6, %s1280_s14  ;;  %s955_s30 = sld [smem:[#allocation2]] (!%p194_p3) }
   0x7   : > { %197 = sbr.rel (%p194_p3) target bundleno = 235 (0xeb), region = 32 }
   0x8   : > { %p1381_p4 = scmp.lt.s32.totalorder (!%p194_p3), %s240_s29, 11 }
   0xc   : > { %v681_v0 = vld [vmem:[%s1586_s1 + $0xf0] sm:$0xff]  ;;  %v682_v1 = vld [vmem:[%s1586_s1 + $0xf8] sm:$0xff]  ;;  %v679_v2 = vld [vmem:[%s1586_s1 + $0xe0] sm:$0xff]  ;;  %v557_v20 = vlaneseq  ;;  %s1595_s29 = smov (!%p1381_p4, %s240_s29), 11 }
   0xd   : > { %791 = vmatpush.msra.mxu0 %v681_v0  ;;  %861 = vmatpush.msra.mxu2 %v682_v1  ;;  %v680_v3 = vld [vmem:[%s1586_s1 + $0xe8] sm:$0xff]  ;;  %v677_v4 = vld [vmem:[%s1586_s1 + $0xd0] sm:$0xff]  ;;  %v678_v5 = vld [vmem:[%s1586_s1 + $0xd8] sm:$0xff]  ;;  %s1215_s9 = sshll.u32 %s1595_s29, 4 }
   0xe   : > { %v675_v6 = vld [vmem:[%s1586_s1 + $0xc0] sm:$0xff]  ;;  %v676_v7 = vld [vmem:[%s1586_s1 + $0xc8] sm:$0xff]  ;;  %v673_v10 = vld [vmem:[%s1586_s1 + $0xb0] sm:$0xff]  ;;  %v558_v29 = vand.u32 127, %v557_v20  ;;  %s1468_s24 = scalar_lea.vmem %s1585_s0, %s1215_s9  ;;  %s1553_s5 = scalar_lea.vmem %s1588_s3, %s1215_s9 }
   0xf   : > { %792 = vmatpush.msra.mxu0 %v679_v2  ;;  %862 = vmatpush.msra.mxu2 %v680_v3  ;;  %v699_v8 = vld [vmem:[%s1586_s1 + $0x180] sm:$0xff]  ;;  %v700_v9 = vld [vmem:[%s1586_s1 + $0x188] sm:$0xff]  ;;  %v674_v11 = vld [vmem:[%s1586_s1 + $0xb8] sm:$0xff] }
  0x10   : > { %833 = vmatpush.msra.mxu1 %v699_v8  ;;  %903 = vmatpush.msra.mxu3 %v700_v9  ;;  %v697_v12 = vld [vmem:[%s1586_s1 + $0x170] sm:$0xff]  ;;  %v698_v13 = vld [vmem:[%s1586_s1 + $0x178] sm:$0xff]  ;;  %v695_v14 = vld [vmem:[%s1586_s1 + $0x160] sm:$0xff]  ;;  %v1455_v38 = vadd.s32 128, %v558_v29 }
  0x11   : > { %793 = vmatpush.msra.mxu0 %v677_v4  ;;  %863 = vmatpush.msra.mxu2 %v678_v5  ;;  %v671_v15 = vld [vmem:[%s1586_s1 + $0xa0] sm:$0xff]  ;;  %v672_v16 = vld [vmem:[%s1586_s1 + $0xa8] sm:$0xff]  ;;  %v693_v18 = vld [vmem:[%s1586_s1 + $0x150] sm:$0xff] }
  0x12   : > { %834 = vmatpush.msra.mxu1 %v697_v12  ;;  %904 = vmatpush.msra.mxu3 %v698_v13  ;;  %v696_v17 = vld [vmem:[%s1586_s1 + $0x168] sm:$0xff]  ;;  %v694_v19 = vld [vmem:[%s1586_s1 + $0x158] sm:$0xff]  ;;  %v669_v21 = vld [vmem:[%s1586_s1 + $0x90] sm:$0xff]  ;;  %vm561_vm0 = vcmp.lt.s32.totalorder %v1455_v38, 200 }
  0x13   : > { %794 = vmatpush.msra.mxu0 %v675_v6  ;;  %864 = vmatpush.msra.mxu2 %v676_v7  ;;  %v670_v22 = vld [vmem:[%s1586_s1 + $0x98] sm:$0xff]  ;;  %v691_v23 = vld [vmem:[%s1586_s1 + $0x140] sm:$0xff]  ;;  %v692_v24 = vld [vmem:[%s1586_s1 + $0x148] sm:$0xff]  ;;  %v1543_v6 = vstv %s955_s30 }
  0x14   : > { %835 = vmatpush.msra.mxu1 %v695_v14  ;;  %905 = vmatpush.msra.mxu3 %v696_v17  ;;  %v667_v25 = vld [vmem:[%s1586_s1 + $0x80] sm:$0xff]  ;;  %v668_v26 = vld [vmem:[%s1586_s1 + $0x88] sm:$0xff]  ;;  %v689_v27 = vld [vmem:[%s1586_s1 + $0x130] sm:$0xff] }
  0x15   : > { %795 = vmatpush.msra.mxu0 %v673_v10  ;;  %865 = vmatpush.msra.mxu2 %v674_v11  ;;  %v690_v28 = vld [vmem:[%s1586_s1 + $0x138] sm:$0xff]  ;;  %v665_v30 = vld [vmem:[%s1586_s1 + $0x70] sm:$0xff]  ;;  %v687_v32 = vld [vmem:[%s1586_s1 + $0x120] sm:$0xff] }
  0x16   : > { %836 = vmatpush.msra.mxu1 %v693_v18  ;;  %906 = vmatpush.msra.mxu3 %v694_v19  ;;  %v666_v31 = vld [vmem:[%s1586_s1 + $0x78] sm:$0xff]  ;;  %v688_v33 = vld [vmem:[%s1586_s1 + $0x128] sm:$0xff]  ;;  %v663_v34 = vld [vmem:[%s1586_s1 + $0x60] sm:$0xff] }
  0x17   : > { %796 = vmatpush.msra.mxu0 %v671_v15  ;;  %866 = vmatpush.msra.mxu2 %v672_v16  ;;  %v664_v35 = vld [vmem:[%s1586_s1 + $0x68] sm:$0xff]  ;;  %v685_v36 = vld [vmem:[%s1586_s1 + $0x110] sm:$0xff]  ;;  %v686_v37 = vld [vmem:[%s1586_s1 + $0x118] sm:$0xff] }
  0x18   : > { %837 = vmatpush.msra.mxu1 %v691_v23  ;;  %907 = vmatpush.msra.mxu3 %v692_v24  ;;  %v661_v39 = vld [vmem:[%s1586_s1 + $0x50] sm:$0xff]  ;;  %v662_v40 = vld [vmem:[%s1586_s1 + $0x58] sm:$0xff]  ;;  %v683_v41 = vld [vmem:[%s1586_s1 + $0x100] sm:$0xff] }
  0x19   : > { %797 = vmatpush.msra.mxu0 %v669_v21  ;;  %867 = vmatpush.msra.mxu2 %v670_v22  ;;  %v684_v42 = vld [vmem:[%s1586_s1 + $0x108] sm:$0xff]  ;;  %v659_v43 = vld [vmem:[%s1586_s1 + $0x40] sm:$0xff]  ;;  %v657_v46 = vld [vmem:[%s1586_s1 + $0x30] sm:$0xff] }
  0x1a   : > { %838 = vmatpush.msra.mxu1 %v689_v27  ;;  %908 = vmatpush.msra.mxu3 %v690_v28  ;;  %v660_v44 = vld [vmem:[%s1586_s1 + $0x48] sm:$0xff]  ;;  %v658_v47 = vld [vmem:[%s1586_s1 + $0x38] sm:$0xff]  ;;  %v655_v48 = vld [vmem:[%s1586_s1 + $0x20] sm:$0xff] }
  0x1b   : > { %798 = vmatpush.msra.mxu0 %v667_v25  ;;  %868 = vmatpush.msra.mxu2 %v668_v26  ;;  %v563_v45 = vld [vmem:[%s1468_s24 + $0x8] sm:$0xff]  ;;  %v653_v50 = vld [vmem:[%s1586_s1 + $0x10] sm:$0xff]  ;;  %v654_v51 = vld [vmem:[%s1586_s1 + $0x18] sm:$0xff] }
  0x1c   : > { %839 = vmatpush.msra.mxu1 %v687_v32  ;;  %909 = vmatpush.msra.mxu3 %v688_v33  ;;  %v656_v49 = vld [vmem:[%s1586_s1 + $0x28] sm:$0xff]  ;;  %v651_v52 = vld [vmem:[%s1586_s1] sm:$0xff]  ;;  %v565_v55 = vld [vmem:[%s1468_s24 + $0x18] sm:$0xff] }
  0x1d   : > { %799 = vmatpush.msra.mxu0 %v665_v30  ;;  %869 = vmatpush.msra.mxu2 %v666_v31  ;;  %v652_v53 = vld [vmem:[%s1586_s1 + $0x8] sm:$0xff]  ;;  %v562_v54 = vld [vmem:[%s1468_s24] sm:$0xff]  ;;  %v564_v56 = vld [vmem:[%s1468_s24 + $0x10] sm:$0xff] }
  0x1e   : > { %840 = vmatpush.msra.mxu1 %v685_v36  ;;  %910 = vmatpush.msra.mxu3 %v686_v37  ;;  %v567_v57 = vld [vmem:[%s1468_s24 + $0x28] sm:$0xff]  ;;  %v566_v58 = vld [vmem:[%s1468_s24 + $0x20] sm:$0xff]  ;;  %v569_v59 = vld [vmem:[%s1468_s24 + $0x38] sm:$0xff] }
  0x1f   : > { %800 = vmatpush.msra.mxu0 %v663_v34  ;;  %870 = vmatpush.msra.mxu2 %v664_v35  ;;  %v568_v60 = vld [vmem:[%s1468_s24 + $0x30] sm:$0xff]  ;;  %v571_v61 = vld [vmem:[%s1468_s24 + $0x48] sm:$0xff]  ;;  %v570_v62 = vld [vmem:[%s1468_s24 + $0x40] sm:$0xff] }
  0x20   : > { %841 = vmatpush.msra.mxu1 %v683_v41  ;;  %911 = vmatpush.msra.mxu3 %v684_v42  ;;  %v573_v63 = vld [vmem:[%s1468_s24 + $0x58] sm:$0xff]  ;;  %v572_v0 = vld [vmem:[%s1468_s24 + $0x50] sm:$0xff] }
  0x21   : > { %801 = vmatpush.msra.mxu0 %v661_v39  ;;  %871 = vmatpush.msra.mxu2 %v662_v40 }
  0x22   : > { %1201 = vmatmul.msk.f32.vlgmr.msra.gmra.mxu1 %vm561_vm0, %v563_v45  ;;  %1207 = vmatmul.msk.f32.vlgmr.msra.gmra.mxu3 %vm561_vm0, %v563_v45 }
  0x23   : > { %802 = vmatpush.msra.mxu0 %v659_v43  ;;  %872 = vmatpush.msra.mxu2 %v660_v44 }
  0x25   : > { %803 = vmatpush.msra.mxu0 %v657_v46  ;;  %873 = vmatpush.msra.mxu2 %v658_v47 }
  0x27   : > { %804 = vmatpush.msra.mxu0 %v655_v48  ;;  %874 = vmatpush.msra.mxu2 %v656_v49 }
  0x29   : > { %805 = vmatpush.msra.mxu0 %v653_v50  ;;  %875 = vmatpush.msra.mxu2 %v654_v51 }
  0x2a   : > { %1202 = vmatmul.msk.f32.gmra.mxu1 %vm561_vm0, %v565_v55  ;;  %1208 = vmatmul.msk.f32.gmra.mxu3 %vm561_vm0, %v565_v55 }
  0x2b   : > { %806 = vmatpush.msra.mxu0 %v651_v52  ;;  %876 = vmatpush.msra.mxu2 %v652_v53 }
  0x2c   : > { %807 = vmatmul.f32.vlgmr.msra.gmra.mxu0 %v562_v54  ;;  %877 = vmatmul.f32.vlgmr.msra.gmra.mxu2 %v562_v54 }
  0x32   : > { %1203 = vmatmul.msk.f32.gmra.mxu1 %vm561_vm0, %v567_v57  ;;  %1209 = vmatmul.msk.f32.gmra.mxu3 %vm561_vm0, %v567_v57 }
  0x34   : > { %810 = vmatmul.f32.gmra.mxu0 %v564_v56  ;;  %880 = vmatmul.f32.gmra.mxu2 %v564_v56 }
  0x3a   : > { %1204 = vmatmul.msk.f32.gmra.mxu1 %vm561_vm0, %v569_v59  ;;  %1210 = vmatmul.msk.f32.gmra.mxu3 %vm561_vm0, %v569_v59 }
  0x3c   : > { %813 = vmatmul.f32.gmra.mxu0 %v566_v58  ;;  %883 = vmatmul.f32.gmra.mxu2 %v566_v58 }
  0x42   : > { %1205 = vmatmul.msk.f32.gmra.mxu1 %vm561_vm0, %v571_v61  ;;  %1211 = vmatmul.msk.f32.gmra.mxu3 %vm561_vm0, %v571_v61 }
  0x44   : > { %816 = vmatmul.f32.gmra.mxu0 %v568_v60  ;;  %886 = vmatmul.f32.gmra.mxu2 %v568_v60 }
  0x4a   : > { %1206 = vmatmul.msk.f32.gmra.mxu1 %vm561_vm0, %v573_v63  ;;  %1212 = vmatmul.msk.f32.gmra.mxu3 %vm561_vm0, %v573_v63 }
  0x4c   : > { %819 = vmatmul.f32.gmra.mxu0 %v570_v62  ;;  %889 = vmatmul.f32.gmra.mxu2 %v570_v62 }
  0x54   : > { %822 = vmatmul.f32.gmra.mxu0 %v572_v0  ;;  %892 = vmatmul.f32.gmra.mxu2 %v572_v0 }
  0x9f   : > { %v843_v1 = vpop.f32.mrf.mxu1 }
  0xa5   : > { %v913_v2 = vpop.f32.mrf.mxu3 }
  0xa7   : > { %v846_v5 = vpop.f32.mrf.mxu1 }
  0xa9   : > { %v808_v3 = vpop.f32.mrf.mxu0 }
  0xaa   : > { %v844_v4 = vadd.f32 %v843_v1, %v808_v3 }
  0xac   : > { %v968_v7 = vsub.f32 1.0, %v844_v4 }
  0xad   : > { %v916_v11 = vpop.f32.mrf.mxu3 }
  0xae   : > { %v981_v9 = vmul.f32 %v1543_v6, %v968_v7 }
  0xaf   : > { %v878_v8 = vpop.f32.mrf.mxu2  ;;  %v849_v14 = vpop.f32.mrf.mxu1 }
  0xb0   : > { %v914_v10 = vadd.f32 %v913_v2, %v878_v8  ;;  %v1017_v13 = vmin.f32 %v981_v9, 0.0  ;;  %v1005_v28 = vadd.f32 1.0, %v981_v9  ;;  %vm993_vm1 = vcmp.gt.f32.partialorder %v981_v9, 0.0 }
  0xb1   : > { %v811_v12 = vpop.f32.mrf.mxu0 }
  0xb2   : > { %v847_v15 = vadd.f32 %v846_v5, %v811_v12  ;;  %v1029_v16 = vmul.f32 1.442695, %v1017_v13  ;;  %v969_v17 = vsub.f32 1.0, %v914_v10 }
  0xb4   : > { %1242 = vpow2.f32 %v1029_v16  ;;  %v982_v18 = vmul.f32 %v1543_v6, %v969_v17  ;;  %v970_v19 = vsub.f32 1.0, %v847_v15 }
  0xb5   : > { %v919_v23 = vpop.f32.mrf.mxu3 }
  0xb6   : > { %v1018_v21 = vmin.f32 %v982_v18, 0.0  ;;  %v983_v24 = vmul.f32 %v1543_v6, %v970_v19  ;;  %v1006_v40 = vadd.f32 1.0, %v982_v18  ;;  %vm994_vm2 = vcmp.gt.f32.partialorder %v982_v18, 0.0 }
  0xb7   : > { %v881_v20 = vpop.f32.mrf.mxu2  ;;  %v852_v30 = vpop.f32.mrf.mxu1 }
  0xb8   : > { %v917_v22 = vadd.f32 %v916_v11, %v881_v20  ;;  %v1031_v26 = vmul.f32 1.442695, %v1018_v21  ;;  %v1019_v29 = vmin.f32 %v983_v24, 0.0  ;;  %v1007_v49 = vadd.f32 1.0, %v983_v24 }
  0xb9   : > { %v814_v25 = vpop.f32.mrf.mxu0  ;;  %vm995_vm3 = vcmp.gt.f32.partialorder %v983_v24, 0.0 }
  0xba   : > { %v850_v27 = vadd.f32 %v849_v14, %v814_v25  ;;  %v1243_v31 = vpop.eup %1242  ;;  %1244 = vpow2.f32 %v1031_v26  ;;  %v971_v32 = vsub.f32 1.0, %v917_v22  ;;  %v1033_v34 = vmul.f32 1.442695, %v1019_v29 }
  0xbb   : > { %v1053_v33 = vsel %vm993_vm1, %v1005_v28, %v1243_v31 }
  0xbc   : > { %1065 = vst [vmem:[%s1553_s5] sm:$0xff] %v1053_v33  ;;  %v984_v35 = vmul.f32 %v1543_v6, %v971_v32  ;;  %v972_v36 = vsub.f32 1.0, %v850_v27  ;;  %1246 = vpow2.f32 %v1033_v34 }
  0xbd   : > { %v922_v43 = vpop.f32.mrf.mxu3 }
  0xbe   : > { %v1020_v38 = vmin.f32 %v984_v35, 0.0  ;;  %v985_v39 = vmul.f32 %v1543_v6, %v972_v36  ;;  %v1008_v59 = vadd.f32 1.0, %v984_v35  ;;  %vm996_vm4 = vcmp.gt.f32.partialorder %v984_v35, 0.0 }
  0xbf   : > { %v884_v37 = vpop.f32.mrf.mxu2  ;;  %v855_v53 = vpop.f32.mrf.mxu1 }
  0xc0   : > { %v920_v41 = vadd.f32 %v919_v23, %v884_v37  ;;  %v1245_v44 = vpop.eup %1244  ;;  %v1035_v45 = vmul.f32 1.442695, %v1020_v38  ;;  %v1021_v46 = vmin.f32 %v985_v39, 0.0  ;;  %v1009_v2 = vadd.f32 1.0, %v985_v39 }
  0xc1   : > { %v817_v42 = vpop.f32.mrf.mxu0  ;;  %v1054_v47 = vsel %vm994_vm2, %v1006_v40, %v1245_v44  ;;  %vm997_vm5 = vcmp.gt.f32.partialorder %v985_v39, 0.0 }
  0xc2   : > { %v853_v48 = vadd.f32 %v852_v30, %v817_v42  ;;  %1066 = vst [vmem:[%s1553_s5 + $0x8] sm:$0xff] %v1054_v47  ;;  %1248 = vpow2.f32 %v1035_v45  ;;  %v1037_v50 = vmul.f32 1.442695, %v1021_v46  ;;  %v1247_v51 = vpop.eup %1246  ;;  %v973_v52 = vsub.f32 1.0, %v920_v41 }
  0xc3   : > { %v1055_v54 = vsel %vm995_vm3, %v1007_v49, %v1247_v51 }
  0xc4   : > { %1250 = vpow2.f32 %v1037_v50  ;;  %1067 = vst [vmem:[%s1553_s5 + $0x10] sm:$0xff] %v1055_v54  ;;  %v986_v55 = vmul.f32 %v1543_v6, %v973_v52  ;;  %v974_v56 = vsub.f32 1.0, %v853_v48 }
  0xc5   : > { %v925_v4 = vpop.f32.mrf.mxu3 }
  0xc6   : > { %v1022_v60 = vmin.f32 %v986_v55, 0.0  ;;  %v987_v61 = vmul.f32 %v1543_v6, %v974_v56  ;;  %v1010_v19 = vadd.f32 1.0, %v986_v55  ;;  %vm998_vm6 = vcmp.gt.f32.partialorder %v986_v55, 0.0 }
  0xc7   : > { %v887_v57 = vpop.f32.mrf.mxu2  ;;  %v858_v14 = vpop.f32.mrf.mxu1 }
  0xc8   : > { %v923_v58 = vadd.f32 %v922_v43, %v887_v57  ;;  %v1249_v63 = vpop.eup %1248  ;;  %v1039_v3 = vmul.f32 1.442695, %v1022_v60  ;;  %v1023_v7 = vmin.f32 %v987_v61, 0.0  ;;  %v1011_v25 = vadd.f32 1.0, %v987_v61 }
  0xc9   : > { %v820_v62 = vpop.f32.mrf.mxu0  ;;  %v1056_v1 = vsel %vm996_vm4, %v1008_v59, %v1249_v63  ;;  %vm999_vm7 = vcmp.gt.f32.partialorder %v987_v61, 0.0 }
  0xca   : > { %v856_v0 = vadd.f32 %v855_v53, %v820_v62  ;;  %v1251_v5 = vpop.eup %1250  ;;  %1068 = vst [vmem:[%s1553_s5 + $0x18] sm:$0xff] %v1056_v1  ;;  %v975_v8 = vsub.f32 1.0, %v923_v58  ;;  %1252 = vpow2.f32 %v1039_v3  ;;  %v1041_v10 = vmul.f32 1.442695, %v1023_v7 }
  0xcb   : > { %v1057_v9 = vsel %vm997_vm5, %v1009_v2, %v1251_v5 }
  0xcc   : > { %1069 = vst [vmem:[%s1553_s5 + $0x20] sm:$0xff] %v1057_v9  ;;  %v988_v11 = vmul.f32 %v1543_v6, %v975_v8  ;;  %v976_v12 = vsub.f32 1.0, %v856_v0  ;;  %1254 = vpow2.f32 %v1041_v10 }
  0xcd   : > { %v928_v28 = vpop.f32.mrf.mxu3 }
  0xce   : > { %v1024_v15 = vmin.f32 %v988_v11, 0.0  ;;  %v989_v16 = vmul.f32 %v1543_v6, %v976_v12  ;;  %v1012_v36 = vadd.f32 1.0, %v988_v11  ;;  %vm1000_vm8 = vcmp.gt.f32.partialorder %v988_v11, 0.0 }
  0xcf   : > { %v890_v13 = vpop.f32.mrf.mxu2 }
  0xd0   : > { %v926_v17 = vadd.f32 %v925_v4, %v890_v13  ;;  %v1043_v20 = vmul.f32 1.442695, %v1024_v15  ;;  %v1253_v22 = vpop.eup %1252  ;;  %v1025_v23 = vmin.f32 %v989_v16, 0.0  ;;  %v1013_v42 = vadd.f32 1.0, %v989_v16 }
  0xd1   : > { %v823_v18 = vpop.f32.mrf.mxu0  ;;  %v1058_v24 = vsel %vm998_vm6, %v1010_v19, %v1253_v22  ;;  %vm1001_vm9 = vcmp.gt.f32.partialorder %v989_v16, 0.0 }
  0xd2   : > { %v859_v21 = vadd.f32 %v858_v14, %v823_v18  ;;  %1256 = vpow2.f32 %v1043_v20  ;;  %1070 = vst [vmem:[%s1553_s5 + $0x28] sm:$0xff] %v1058_v24  ;;  %v1045_v26 = vmul.f32 1.442695, %v1025_v23  ;;  %v977_v27 = vsub.f32 1.0, %v926_v17  ;;  %v1255_v29 = vpop.eup %1254 }
  0xd3   : > { %v1059_v31 = vsel %vm999_vm7, %v1011_v25, %v1255_v29 }
  0xd4   : > { %v978_v30 = vsub.f32 1.0, %v859_v21  ;;  %1258 = vpow2.f32 %v1045_v26  ;;  %v990_v32 = vmul.f32 %v1543_v6, %v977_v27  ;;  %1071 = vst [vmem:[%s1553_s5 + $0x30] sm:$0xff] %v1059_v31 }
  0xd6   : > { %v991_v34 = vmul.f32 %v1543_v6, %v978_v30  ;;  %v1026_v37 = vmin.f32 %v990_v32, 0.0  ;;  %v1014_v49 = vadd.f32 1.0, %v990_v32  ;;  %vm1002_vm10 = vcmp.gt.f32.partialorder %v990_v32, 0.0 }
  0xd7   : > { %v893_v33 = vpop.f32.mrf.mxu2 }
  0xd8   : > { %v929_v35 = vadd.f32 %v928_v28, %v893_v33  ;;  %v1257_v38 = vpop.eup %1256  ;;  %v1027_v39 = vmin.f32 %v991_v34, 0.0  ;;  %v1047_v41 = vmul.f32 1.442695, %v1026_v37  ;;  %v1015_v52 = vadd.f32 1.0, %v991_v34 }
  0xd9   : > { %v1060_v40 = vsel %vm1000_vm8, %v1012_v36, %v1257_v38  ;;  %vm1003_vm11 = vcmp.gt.f32.partialorder %v991_v34, 0.0 }
  0xda   : > { %1072 = vst [vmem:[%s1553_s5 + $0x38] sm:$0xff] %v1060_v40  ;;  %v1049_v43 = vmul.f32 1.442695, %v1027_v39  ;;  %v979_v44 = vsub.f32 1.0, %v929_v35  ;;  %v1259_v45 = vpop.eup %1258  ;;  %1260 = vpow2.f32 %v1047_v41 }
  0xdb   : > { %v1061_v46 = vsel %vm1001_vm9, %v1013_v42, %v1259_v45 }
  0xdc   : > { %1262 = vpow2.f32 %v1049_v43  ;;  %v992_v47 = vmul.f32 %v1543_v6, %v979_v44  ;;  %1073 = vst [vmem:[%s1553_s5 + $0x40] sm:$0xff] %v1061_v46 }
  0xde   : > { %v1028_v48 = vmin.f32 %v992_v47, 0.0  ;;  %v1016_v56 = vadd.f32 1.0, %v992_v47  ;;  %vm1004_vm12 = vcmp.gt.f32.partialorder %v992_v47, 0.0 }
  0xe0   : > { %v1051_v50 = vmul.f32 1.442695, %v1028_v48  ;;  %v1261_v51 = vpop.eup %1260 }
  0xe1   : > { %v1062_v54 = vsel %vm1002_vm10, %v1014_v49, %v1261_v51 }
  0xe2   : > { %v1263_v53 = vpop.eup %1262  ;;  %1264 = vpow2.f32 %v1051_v50  ;;  %1074 = vst [vmem:[%s1553_s5 + $0x48] sm:$0xff] %v1062_v54 }
  0xe3   : > { %v1063_v55 = vsel %vm1003_vm11, %v1015_v52, %v1263_v53 }
  0xe4   : > { %1075 = vst [vmem:[%s1553_s5 + $0x50] sm:$0xff] %v1063_v55 }
  0xe8   : > { %v1265_v57 = vpop.eup %1264 }
  0xe9   : > { %v1064_v58 = vsel %vm1004_vm12, %v1016_v56, %v1265_v57 }
  0xea   : > { %1076 = vst [vmem:[%s1553_s5 + $0x58] sm:$0xff] %v1064_v58 }
  0xeb PF: > { %s14_s16 = sadd.s32 1, %s1288_s16   ;;  %s1590_s14 = smov %s1284_s15 }
  0xec   : > { %p11_p5 = scmp.ge.s32.totalorder %s14_s16, 4   ;;  %s1591_s15 = smov %s1593_s2 }
  0xee   :  { %13 = sbr.rel (!%p11_p5) target bundleno = 2 (0x2), region = 77 }

</bundles_post_ra>
